<compile_context>
chip_gen: v7x
topology: tpu7x:2x2x1
jax: 0.10.0
libtpu: 0.0.40
codegen_flags: <defaults>
</compile_context>

<pallas_src>
import jax
import jax.numpy as jnp
from jax.experimental import pallas as pl
from jax.experimental.pallas import tpu as pltpu


def se_kernel(xse_ref, w_ref, x_ref, o_ref):
    # Blocks (leading grid dim kept size-1, indexed with [0]):
    #   xse_ref: (1, Cin+1)       w_ref: (1, Ct, Cin+1)
    #   x_ref/o_ref: (1, Ct, HW)
    w = w_ref[0]                                      # (Ct, Cin+1)
    xse = xse_ref[...]                                # (1, Cin+1) -> bcast over sublanes
    # 1x1 conv on a 1x1 spatial input == per-channel dot product (bias folded
    # in as the last "input channel" against the appended ones column).
    g = jnp.sum(w * xse, axis=-1, keepdims=True)      # (Ct, 1) f32
    gate = jax.nn.sigmoid(g)                          # (Ct, 1), EUP
    o_ref[0] = (x_ref[0] * gate).astype(o_ref.dtype)  # (Ct, HW), lane-dense store


def _default_num_tiles():
    # v7x has 2 TensorCores per chip: give each TC one parallel tile.
    # v5e/v6e are single-TC and DMA-bound here, so one big block is best
    # (fewer grid steps, and ct=216 avoids the 108->112 sublane pad).
    try:
        kind = jax.devices()[0].device_kind.lower()
        if "v7" in kind:
            return 2
    except Exception:
        pass
    return 1


def se_conv_sigmoid_mul(x_se_nchw, w_oi, b, x_nchw, *, num_tiles=None):
    """x_se_nchw: (N, Cin, 1, 1); w_oi: (Cout, Cin) (or (Cout, Cin, 1, 1));
    b: (Cout,); x_nchw: (N, Cout, H, W).  Returns (N, Cout, H, W).
    Assumes N == 1 (as in the reference module)."""
    N, Cout, H, W = x_nchw.shape
    Cin = x_se_nchw.shape[1]
    assert N == 1, "gate broadcast / free NCHW reshape implemented for batch size 1"

    if num_tiles is None:
        num_tiles = _default_num_tiles()
    assert Cout % num_tiles == 0
    ct = Cout // num_tiles
    HW = H * W

    # Fold the bias into the matvec: ones column on the SE vector, bias as an
    # extra weight column.
    x_se = jnp.concatenate(
        [x_se_nchw.reshape(1, Cin), jnp.ones((1, 1), x_se_nchw.dtype)], axis=-1)      # (1, Cin+1)
    w_aug = jnp.concatenate(
        [w_oi.reshape(Cout, Cin), b.reshape(Cout, 1).astype(w_oi.dtype)], axis=-1)    # (Cout, Cin+1)
    w3 = w_aug.reshape(num_tiles, ct, Cin + 1)
    x3 = x_nchw.reshape(num_tiles, ct, HW)             # free reshape (N==1, contiguous)

    itemsize = jnp.dtype(x_nchw.dtype).itemsize
    cost = pl.CostEstimate(
        flops=2 * Cout * (Cin + 1) + Cout * HW,
        transcendentals=Cout,
        bytes_accessed=2 * Cout * HW * itemsize
        + Cout * (Cin + 1) * jnp.dtype(w_aug.dtype).itemsize
        + (Cin + 1) * jnp.dtype(x_se.dtype).itemsize,
    )

    # VMEM: double-buffered in+out feature blocks are <= ~2.7 MB (num_tiles=1),
    # far under scoped limits on v5e/v6e/v7x -> no vmem_limit_bytes plumbing.
    out3 = pl.pallas_call(
        se_kernel,
        out_shape=jax.ShapeDtypeStruct((num_tiles, ct, HW), x_nchw.dtype),
        grid_spec=pltpu.PrefetchScalarGridSpec(
            num_scalar_prefetch=0,
            grid=(num_tiles,),
            in_specs=[
                pl.BlockSpec((1, Cin + 1), lambda i: (0, 0)),          # SE vector (+ ones)
                pl.BlockSpec((1, ct, Cin + 1), lambda i: (i, 0, 0)),   # weight (+ bias) tile
                pl.BlockSpec((1, ct, HW), lambda i: (i, 0, 0)),        # feature tile
            ],
            out_specs=pl.BlockSpec((1, ct, HW), lambda i: (i, 0, 0)),
        ),
        input_output_aliases={2: 0},   # feature-map input aliases the output
        compiler_params=pltpu.CompilerParams(
            dimension_semantics=("parallel",)),
        cost_estimate=cost,
    )(x_se, w3, x3)

    return out3.reshape(N, Cout, H, W)


if __name__ == "__main__":
    key = jax.random.PRNGKey(0)
    k1, k2, k3, k4 = jax.random.split(key, 4)

    N, Cin, Cout, H, W = 1, 54, 216, 28, 28

    # Inputs matching the module's forward signature.
    x112 = jax.random.normal(k1, (N, Cin, 1, 1), dtype=jnp.float32)
    x109 = jax.random.normal(k2, (N, Cout, H, W), dtype=jnp.float32)

    # Deterministic parameter init (PyTorch Conv2d weight shape: (Cout, Cin, 1, 1)).
    bound = 1.0 / (Cin ** 0.5)
    w = jax.random.uniform(k3, (Cout, Cin), jnp.float32, -bound, bound)
    b = jax.random.uniform(k4, (Cout,), jnp.float32, -bound, bound)

    out = se_conv_sigmoid_mul(x112, w, b, x109)
    out = jax.block_until_ready(out)

    # Pure-JAX reference check (elementwise f32 reduction to match kernel math).
    gate_ref = jax.nn.sigmoid(
        jnp.sum(x112.reshape(N, 1, Cin) * w.reshape(1, Cout, Cin), axis=-1) + b)  # (1, Cout)
    ref = x109 * gate_ref.reshape(N, Cout, 1, 1)
    assert out.shape == (N, Cout, H, W)
    assert jnp.allclose(out, ref, atol=1e-5, rtol=1e-5)

    print("KERNEL_OK")
</pallas_src>

<mosaic_0001>
module attributes {stable_mosaic.version = 11 : i64} {
  func.func @se_kernel(%arg0: i32, %arg1: memref<1x55xf32, #tpu.memory_space<vmem>>, %arg2: memref<1x216x55xf32, #tpu.memory_space<vmem>>, %arg3: memref<1x216x784xf32, #tpu.memory_space<vmem>>, %arg4: memref<1x216x784xf32, #tpu.memory_space<vmem>>) attributes {dimension_semantics = [#tpu.dimension_semantics<parallel>], iteration_bounds = array<i64: 1>, scalar_prefetch = 0 : i64, scratch_operands = 0 : i64, tpu.core_type = #tpu.core_type<tc>, window_params = [{pipeline_mode = #tpu.pipeline_mode<synchronous>, transform_indices = @transform_0, window_bounds = array<i64: 1, 55>}, {transform_indices = @transform_1, window_bounds = array<i64: 1, 216, 55>}, {transform_indices = @transform_2, window_bounds = array<i64: 1, 216, 784>}, {transform_indices = @transform_3, window_bounds = array<i64: 1, 216, 784>}]} {
    %c0 = arith.constant 0 : index
    %c0_0 = arith.constant 0 : index
    %c0_1 = arith.constant 0 : index
    %0 = vector.load %arg2[%c0, %c0_0, %c0_1] : memref<1x216x55xf32, #tpu.memory_space<vmem>>, vector<1x216x55xf32>
    %1 = vector.shape_cast %0 : vector<1x216x55xf32> to vector<216x55xf32>
    %c0_2 = arith.constant 0 : index
    %c0_3 = arith.constant 0 : index
    %2 = vector.load %arg1[%c0_2, %c0_3] : memref<1x55xf32, #tpu.memory_space<vmem>>, vector<1x55xf32>
    %3 = vector.broadcast %2 : vector<1x55xf32> to vector<216x55xf32>
    %4 = arith.mulf %1, %3 : vector<216x55xf32>
    %cst = arith.constant dense<0.000000e+00> : vector<216xf32>
    %5 = vector.multi_reduction <add>, %4, %cst [1] : vector<216x55xf32> to vector<216xf32>
    %6 = vector.shape_cast %5 : vector<216xf32> to vector<216x1xf32>
    %7 = arith.negf %6 : vector<216x1xf32>
    %8 = math.exp %7 : vector<216x1xf32>
    %cst_4 = arith.constant 1.000000e+00 : f32
    %9 = vector.broadcast %cst_4 : f32 to vector<216x1xf32>
    %10 = arith.addf %9, %8 : vector<216x1xf32>
    %11 = arith.divf %9, %10 : vector<216x1xf32>
    %c0_5 = arith.constant 0 : index
    %c0_6 = arith.constant 0 : index
    %c0_7 = arith.constant 0 : index
    %12 = vector.load %arg3[%c0_5, %c0_6, %c0_7] : memref<1x216x784xf32, #tpu.memory_space<vmem>>, vector<1x216x784xf32>
    %13 = vector.shape_cast %12 : vector<1x216x784xf32> to vector<216x784xf32>
    %14 = vector.broadcast %11 : vector<216x1xf32> to vector<216x784xf32>
    %15 = arith.mulf %13, %14 : vector<216x784xf32>
    %c0_8 = arith.constant 0 : index
    %c0_9 = arith.constant 0 : index
    %c0_10 = arith.constant 0 : index
    %16 = vector.load %arg4[%c0_8, %c0_9, %c0_10] : memref<1x216x784xf32, #tpu.memory_space<vmem>>, vector<1x216x784xf32>
    %17 = vector.shape_cast %16 : vector<1x216x784xf32> to vector<216x784xf32>
    %18 = vector.shape_cast %15 : vector<216x784xf32> to vector<1x216x784xf32>
    tpu.vector_store %arg4[%c0_8, %c0_9, %c0_10], %18 {strides = array<i32>} : memref<1x216x784xf32, #tpu.memory_space<vmem>>, vector<1x216x784xf32>,
    return
  }
  func.func @transform_0(%arg0: i32) -> (i32, i32) {
    %c0_i32 = arith.constant 0 : i32
    %c0_i32_0 = arith.constant 0 : i32
    %c0_i32_1 = arith.constant 0 : i32
    return %c0_i32, %c0_i32_0 : i32, i32
  }
  func.func @transform_1(%arg0: i32) -> (i32, i32, i32) {
    %c0_i32 = arith.constant 0 : i32
    %c0_i32_0 = arith.constant 0 : i32
    %c0_i32_1 = arith.constant 0 : i32
    return %arg0, %c0_i32, %c0_i32_0 : i32, i32, i32
  }
  func.func @transform_2(%arg0: i32) -> (i32, i32, i32) {
    %c0_i32 = arith.constant 0 : i32
    %c0_i32_0 = arith.constant 0 : i32
    %c0_i32_1 = arith.constant 0 : i32
    return %arg0, %c0_i32, %c0_i32_0 : i32, i32, i32
  }
  func.func @transform_3(%arg0: i32) -> (i32, i32, i32) {
    %c0_i32 = arith.constant 0 : i32
    %c0_i32_0 = arith.constant 0 : i32
    %c0_i32_1 = arith.constant 0 : i32
    return %arg0, %c0_i32, %c0_i32_0 : i32, i32, i32
  }
}

</mosaic_0001>

<bundles_post_ra>
// kernel: tpu_custom_call.1
= control target key start
LH: loop header
LB: loop body
LE: loop exit
PB: predicated region body
PF: predicated region fallthrough
CT: control target
= control target key end

     0   :  { %8 = vsyncpa [#allocation3], 0  ;;  %s1397_s0 = inlined_call_operand.vmem [shape: f32[1,55], index: 0, kind: input, shape index: {}]   ;;  %s1398_s1 = inlined_call_operand.vmem [shape: f32[1,216,55], index: 1, kind: input, shape index: {}]   ;;  %s1399_s2 = inlined_call_operand.hbm [shape: f32[1,216,784], index: 2, kind: input, shape index: {}, may-alias: {2,3}]   ;;  %s1400_s3 = inlined_call_operand.hbm [shape: f32[1,216,784], index: 3, kind: output, shape index: {}, may-alias: {2,3}]  }
   0x1   :  { %9 = vsyncpa [#allocation4], 0  ;;  %s1107_s12 = smov [#allocation2]   ;;  %s1059_s16 = scalar_lea.hbm %s1399_s2, 24192 }
   0x2   :  { %s19_s13 = sshll.u32 %s1107_s12, 4  ;;  %p1060_p0 = scmp.ne.s32.totalorder %s1399_s2, %s1059_s16  ;;  %s20_s13 = int_to_ptr.vmem [resolvable:$true] %s19_s13 }
   0x3   :  { %p1063_p1 = scmp.lt.u32.totalorder %s1059_s16, %s1399_s2 }
   0x5   :  { %p1065_p2 = pnand %p1063_p1, %p1060_p0 }
   0x7   :  { %1068 = shalt.err (!%p1065_p2)
}
   0x8   :  { %s1069_s21 = scalar_lea.vmem %s20_s13, 24192  ;;  %p1074_p4 = scmp.lt.s32.totalorder %s20_s13, %s20_s13 }
   0x9   :  { %p1070_p3 = scmp.ne.s32.totalorder %s20_s13, %s1069_s21  ;;  %p1075_p5 = scmp.lt.s32.totalorder %s1069_s21, %s1069_s21 }
   0xb   :  { %p1076_p6 = por %p1075_p5, %p1074_p4 }
   0xd   :  { %p1077_p7 = pnand %p1076_p6, %p1070_p3 }
   0xf   :  { %1080 = shalt.err (!%p1077_p7)
}
  0x10   :  { %s1108_s22 = smov 896   ;;  %s1109_s23 = smov 56  }
  0x11   :  { %25 = dma.hbm_to_vmem [thread:$0]  %s1399_s2, 24192, %s20_s13, [#allocation3], %s1108_s22, %s1108_s22, %s1109_s23  }
  0x12   :  { %1103 = dma.done.wait [#allocation3], 24192  }
  0x13   :  { %1104 = vsyncadd [#allocation3], 4294943104  ;;  %v29_v0 = vld [vmem:[%s1398_s1] sm:$0xff]  ;;  %vm90_vm0 = vcmask 449536   ;;  %v31_v2 = vld [vmem:[%s1398_s1 + $0x10] sm:$0xff]  ;;  %vm718_vm1 = vcmask 130048  }
  0x14   :  { %v1152_v1 = vld [vmem:[%s1397_s0] ss:$0 sm:$0xff]  ;;  %v30_v5 = vld [vmem:[%s1398_s1 + $0x8] sm:$0xff]  ;;  %v32_v6 = vld [vmem:[%s1398_s1 + $0x18] sm:$0xff] }
  0x15   :  { %v63_v3 = vmul.f32 %v1152_v1, %v29_v0  ;;  %v65_v4 = vmul.f32 %v1152_v1, %v31_v2  ;;  %v64_v7 = vmul.f32 %v1152_v1, %v30_v5  ;;  %v66_v8 = vmul.f32 %v1152_v1, %v32_v6  ;;  %v33_v9 = vld [vmem:[%s1398_s1 + $0x20] sm:$0xff]  ;;  %v34_v10 = vld [vmem:[%s1398_s1 + $0x28] sm:$0xff]  ;;  %v35_v17 = vld [vmem:[%s1398_s1 + $0x30] sm:$0xff] }
  0x16   :  { %v67_v15 = vmul.f32 %v1152_v1, %v33_v9  ;;  %v68_v16 = vmul.f32 %v1152_v1, %v34_v10  ;;  %v36_v18 = vld [vmem:[%s1398_s1 + $0x38] sm:$0xff]  ;;  %v69_v21 = vmul.f32 %v1152_v1, %v35_v17  ;;  %v37_v23 = vld [vmem:[%s1398_s1 + $0x40] sm:$0xff]  ;;  %v38_v24 = vld [vmem:[%s1398_s1 + $0x48] sm:$0xff] }
  0x17   :  { %v91_v11 = vsel %vm90_vm0, %v63_v3, 0.0  ;;  %v97_v12 = vsel %vm90_vm0, %v65_v4, 0.0  ;;  %v94_v13 = vsel %vm90_vm0, %v64_v7, 0.0  ;;  %v100_v14 = vsel %vm90_vm0, %v66_v8, 0.0  ;;  %v39_v29 = vld [vmem:[%s1398_s1 + $0x50] sm:$0xff]  ;;  %v40_v30 = vld [vmem:[%s1398_s1 + $0x58] sm:$0xff] }
  0x18   :  { %92 = vadd.xlane.f32.xlu0 %v91_v11  ;;  %98 = vadd.xlane.f32.xlu1 %v97_v12  ;;  %v103_v19 = vsel %vm90_vm0, %v67_v15, 0.0  ;;  %v106_v20 = vsel %vm90_vm0, %v68_v16, 0.0  ;;  %v70_v22 = vmul.f32 %v1152_v1, %v36_v18  ;;  %v109_v25 = vsel %vm90_vm0, %v69_v21, 0.0  ;;  %v41_v35 = vld [vmem:[%s1398_s1 + $0x60] sm:$0xff]  ;;  %v42_v36 = vld [vmem:[%s1398_s1 + $0x68] sm:$0xff]  ;;  %v43_v41 = vld [vmem:[%s1398_s1 + $0x70] sm:$0xff] }
  0x19   :  { %v71_v27 = vmul.f32 %v1152_v1, %v37_v23  ;;  %v72_v28 = vmul.f32 %v1152_v1, %v38_v24  ;;  %v73_v33 = vmul.f32 %v1152_v1, %v39_v29  ;;  %v74_v34 = vmul.f32 %v1152_v1, %v40_v30  ;;  %v44_v42 = vld [vmem:[%s1398_s1 + $0x78] sm:$0xff]  ;;  %v45_v47 = vld [vmem:[%s1398_s1 + $0x80] sm:$0xff]  ;;  %v46_v48 = vld [vmem:[%s1398_s1 + $0x88] sm:$0xff] }
  0x1a   :  { %v112_v26 = vsel %vm90_vm0, %v70_v22, 0.0  ;;  %v75_v39 = vmul.f32 %v1152_v1, %v41_v35  ;;  %v76_v40 = vmul.f32 %v1152_v1, %v42_v36  ;;  %v77_v45 = vmul.f32 %v1152_v1, %v43_v41  ;;  %v47_v53 = vld [vmem:[%s1398_s1 + $0x90] sm:$0xff]  ;;  %v48_v54 = vld [vmem:[%s1398_s1 + $0x98] sm:$0xff]  ;;  %v49_v59 = vld [vmem:[%s1398_s1 + $0xa0] sm:$0xff] }
  0x1b   :  { %v115_v31 = vsel %vm90_vm0, %v71_v27, 0.0  ;;  %v118_v32 = vsel %vm90_vm0, %v72_v28, 0.0  ;;  %v121_v37 = vsel %vm90_vm0, %v73_v33, 0.0  ;;  %v124_v38 = vsel %vm90_vm0, %v74_v34, 0.0  ;;  %v50_v60 = vld [vmem:[%s1398_s1 + $0xa8] sm:$0xff]  ;;  %v51_v2 = vld [vmem:[%s1398_s1 + $0xb0] sm:$0xff] }
  0x1c   :  { %95 = vadd.xlane.f32.xlu0 %v94_v13  ;;  %101 = vadd.xlane.f32.xlu1 %v100_v14  ;;  %v127_v43 = vsel %vm90_vm0, %v75_v39, 0.0  ;;  %v130_v44 = vsel %vm90_vm0, %v76_v40, 0.0  ;;  %v78_v46 = vmul.f32 %v1152_v1, %v44_v42  ;;  %v133_v49 = vsel %vm90_vm0, %v77_v45, 0.0  ;;  %v52_v3 = vld [vmem:[%s1398_s1 + $0xb8] sm:$0xff]  ;;  %v53_v8 = vld [vmem:[%s1398_s1 + $0xc0] sm:$0xff]  ;;  %v54_v9 = vld [vmem:[%s1398_s1 + $0xc8] sm:$0xff] }
  0x1d   :  { %v79_v51 = vmul.f32 %v1152_v1, %v45_v47  ;;  %v80_v52 = vmul.f32 %v1152_v1, %v46_v48  ;;  %v81_v57 = vmul.f32 %v1152_v1, %v47_v53  ;;  %v82_v58 = vmul.f32 %v1152_v1, %v48_v54  ;;  %v55_v14 = vld [vmem:[%s1398_s1 + $0xd0] sm:$0xff]  ;;  %v337_v54 = vld [vmem:[#allocation2 + $0x18] sm:$0xff]  ;;  %s1110_s1 = smov [#allocation5]  }
  0x1e   :  { %v136_v50 = vsel %vm90_vm0, %v78_v46, 0.0  ;;  %v83_v63 = vmul.f32 %v1152_v1, %v49_v59  ;;  %v84_v0 = vmul.f32 %v1152_v1, %v50_v60  ;;  %v85_v6 = vmul.f32 %v1152_v1, %v51_v2  ;;  %v336_v53 = vld [vmem:[#allocation2 + $0x10] sm:$0xff]  ;;  %s907_s28 = sshll.u32 %s1110_s1, 4  ;;  %s908_s28 = int_to_ptr.vmem [resolvable:$true] %s907_s28 }
  0x1f   :  { %v139_v55 = vsel %vm90_vm0, %v79_v51, 0.0  ;;  %v142_v56 = vsel %vm90_vm0, %v80_v52, 0.0  ;;  %v145_v61 = vsel %vm90_vm0, %v81_v57, 0.0  ;;  %v148_v62 = vsel %vm90_vm0, %v82_v58, 0.0  ;;  %v334_v51 = vld [vmem:[#allocation2] sm:$0xff]  ;;  %v335_v52 = vld [vmem:[#allocation2 + $0x8] sm:$0xff]  ;;  %p1086_p9 = scmp.lt.s32.totalorder %s908_s28, %s908_s28 }
  0x20   :  { %104 = vadd.xlane.f32.xlu0 %v103_v19  ;;  %107 = vadd.xlane.f32.xlu1 %v106_v20  ;;  %v151_v4 = vsel %vm90_vm0, %v83_v63, 0.0  ;;  %v154_v5 = vsel %vm90_vm0, %v84_v0, 0.0  ;;  %v86_v7 = vmul.f32 %v1152_v1, %v52_v3  ;;  %v157_v10 = vsel %vm90_vm0, %v85_v6, 0.0  ;;  %v338_v57 = vld [vmem:[#allocation2 + $0x20] sm:$0xff]  ;;  %v339_v58 = vld [vmem:[#allocation2 + $0x28] sm:$0xff]  ;;  %v340_v59 = vld [vmem:[#allocation2 + $0x30] sm:$0xff] }
  0x21   :  { %v87_v12 = vmul.f32 %v1152_v1, %v53_v8  ;;  %v88_v13 = vmul.f32 %v1152_v1, %v54_v9  ;;  %v89_v17 = vmul.f32 %v1152_v1, %v55_v14  ;;  %v350_v63 = vld [vmem:[#allocation2 + $0x80] sm:$0xff]  ;;  %v351_v3 = vld [vmem:[#allocation2 + $0x88] sm:$0xff]  ;;  %v341_v8 = vld [vmem:[#allocation2 + $0x38] sm:$0xff]  ;;  %s1081_s29 = scalar_lea.vmem %s908_s28, 24192 }
  0x22   :  { %v160_v11 = vsel %vm90_vm0, %v86_v7, 0.0  ;;  %v354_v7 = vld [vmem:[#allocation2 + $0xa0] sm:$0xff]  ;;  %p1082_p8 = scmp.ne.s32.totalorder %s908_s28, %s1081_s29  ;;  %p1087_p10 = scmp.lt.s32.totalorder %s1081_s29, %s1081_s29 }
  0x23   :  { %v163_v15 = vsel %vm90_vm0, %v87_v12, 0.0  ;;  %v166_v16 = vsel %vm90_vm0, %v88_v13, 0.0  ;;  %v169_v18 = vsel %vm90_vm0, %v89_v17, 0.0  ;;  %v342_v9 = vld [vmem:[#allocation2 + $0x40] sm:$0xff]  ;;  %v343_v17 = vld [vmem:[#allocation2 + $0x48] sm:$0xff] }
  0x24   :  { %110 = vadd.xlane.f32.xlu0 %v109_v25  ;;  %113 = vadd.xlane.f32.xlu1 %v112_v26  ;;  %p1088_p11 = por %p1087_p10, %p1086_p9 }
  0x26   :  { %p1089_p12 = pnand %p1088_p11, %p1082_p8 }
  0x28   :  { %116 = vadd.xlane.f32.xlu0 %v115_v31  ;;  %119 = vadd.xlane.f32.xlu1 %v118_v32 }
  0x2c   :  { %122 = vadd.xlane.f32.xlu0 %v121_v37  ;;  %125 = vadd.xlane.f32.xlu1 %v124_v38 }
  0x30   :  { %128 = vadd.xlane.f32.xlu0 %v127_v43  ;;  %131 = vadd.xlane.f32.xlu1 %v130_v44 }
  0x34   :  { %134 = vadd.xlane.f32.xlu0 %v133_v49  ;;  %137 = vadd.xlane.f32.xlu1 %v136_v50 }
  0x38   :  { %140 = vadd.xlane.f32.xlu0 %v139_v55  ;;  %143 = vadd.xlane.f32.xlu1 %v142_v56 }
  0x3c   :  { %146 = vadd.xlane.f32.xlu0 %v145_v61  ;;  %149 = vadd.xlane.f32.xlu1 %v148_v62  ;;  %v348_v61 = vld [vmem:[#allocation2 + $0x70] sm:$0xff]  ;;  %v349_v62 = vld [vmem:[#allocation2 + $0x78] sm:$0xff] }
  0x40   :  { %152 = vadd.xlane.f32.xlu0 %v151_v4  ;;  %155 = vadd.xlane.f32.xlu1 %v154_v5  ;;  %v352_v4 = vld [vmem:[#allocation2 + $0x90] sm:$0xff]  ;;  %v353_v5 = vld [vmem:[#allocation2 + $0x98] sm:$0xff] }
  0x44   :  { %158 = vadd.xlane.f32.xlu0 %v157_v10  ;;  %161 = vadd.xlane.f32.xlu1 %v160_v11 }
  0x48   :  { %164 = vadd.xlane.f32.xlu0 %v163_v15  ;;  %167 = vadd.xlane.f32.xlu1 %v166_v16 }
  0x4c   :  { %170 = vadd.xlane.f32.xlu0 %v169_v18  ;;  %v344_v18 = vld [vmem:[#allocation2 + $0x50] sm:$0xff] }
  0xa5   :  { %v93_v19 = vpop.xlane.xlu0 %92  ;;  %v99_v20 = vpop.xlane.xlu1 %98 }
  0xa6   :  { %v920_v21 = vmul.f32 -1.442695, %v93_v19  ;;  %v922_v22 = vmul.f32 -1.442695, %v99_v20  ;;  %v345_v19 = vld [vmem:[#allocation2 + $0x58] sm:$0xff] }
  0xa8   :  { %951 = vpow2.f32 %v920_v21 }
  0xa9   :  { %953 = vpow2.f32 %v922_v22  ;;  %v96_v23 = vpop.xlane.xlu0 %95  ;;  %v102_v24 = vpop.xlane.xlu1 %101 }
  0xaa   :  { %v921_v25 = vmul.f32 -1.442695, %v96_v23  ;;  %v923_v26 = vmul.f32 -1.442695, %v102_v24 }
  0xac   :  { %955 = vpow2.f32 %v921_v25  ;;  %v346_v25 = vld [vmem:[#allocation2 + $0x60] sm:$0xff] }
  0xad   :  { %957 = vpow2.f32 %v923_v26  ;;  %v105_v27 = vpop.xlane.xlu0 %104  ;;  %v108_v28 = vpop.xlane.xlu1 %107  ;;  %v347_v26 = vld [vmem:[#allocation2 + $0x68] sm:$0xff] }
  0xae   :  { %v924_v1 = vmul.f32 -1.442695, %v105_v27  ;;  %v925_v29 = vmul.f32 -1.442695, %v108_v28  ;;  %v355_v27 = vld [vmem:[#allocation2 + $0xa8] sm:$0xff] }
  0xb0   :  { %959 = vpow2.f32 %v924_v1 }
  0xb1   :  { %961 = vpow2.f32 %v925_v29  ;;  %v111_v30 = vpop.xlane.xlu0 %110  ;;  %v114_v31 = vpop.xlane.xlu1 %113 }
  0xb2   :  { %v952_v32 = vpop.eup %951  ;;  %v926_v33 = vmul.f32 -1.442695, %v111_v30  ;;  %v927_v36 = vmul.f32 -1.442695, %v114_v31 }
  0xb3   :  { %v954_v34 = vpop.eup %953  ;;  %v253_v35 = vadd.f32 1.0, %v952_v32  ;;  %v356_v32 = vld [vmem:[#allocation2 + $0xb0] sm:$0xff] }
  0xb4   :  { %v255_v37 = vadd.f32 1.0, %v954_v34  ;;  %963 = vpow2.f32 %v926_v33  ;;  %v357_v33 = vld [vmem:[#allocation2 + $0xb8] sm:$0xff]  ;;  %v358_v34 = vld [vmem:[#allocation2 + $0xc0] sm:$0xff] }
  0xb5   :  { %965 = vrcp.f32 %v253_v35  ;;  %v117_v38 = vpop.xlane.xlu0 %116  ;;  %v120_v39 = vpop.xlane.xlu1 %119 }
  0xb6   :  { %v956_v40 = vpop.eup %955  ;;  %967 = vrcp.f32 %v255_v37  ;;  %v928_v41 = vmul.f32 -1.442695, %v117_v38  ;;  %v929_v44 = vmul.f32 -1.442695, %v120_v39 }
  0xb7   :  { %v958_v42 = vpop.eup %957  ;;  %v254_v43 = vadd.f32 1.0, %v956_v40  ;;  %969 = vpow2.f32 %v927_v36  ;;  %v359_v40 = vld [vmem:[#allocation2 + $0xc8] sm:$0xff] }
  0xb8   :  { %v256_v45 = vadd.f32 1.0, %v958_v42  ;;  %971 = vpow2.f32 %v928_v41  ;;  %v360_v41 = vld [vmem:[#allocation2 + $0xd0] sm:$0xff]  ;;  %v361_v42 = vld [vmem:[#allocation2 + $0xd8] sm:$0xff] }
  0xb9   :  { %973 = vrcp.f32 %v254_v43  ;;  %v123_v46 = vpop.xlane.xlu0 %122  ;;  %v126_v47 = vpop.xlane.xlu1 %125 }
  0xba   :  { %v960_v48 = vpop.eup %959  ;;  %975 = vrcp.f32 %v256_v45  ;;  %v930_v49 = vmul.f32 -1.442695, %v123_v46  ;;  %v931_v56 = vmul.f32 -1.442695, %v126_v47 }
  0xbb   :  { %v962_v50 = vpop.eup %961  ;;  %v257_v55 = vadd.f32 1.0, %v960_v48  ;;  %977 = vpow2.f32 %v929_v44 }
  0xbc   :  { %v258_v60 = vadd.f32 1.0, %v962_v50  ;;  %979 = vpow2.f32 %v930_v49  ;;  %v362_v49 = vld [vmem:[#allocation2 + $0xe0] sm:$0xff]  ;;  %v363_v50 = vld [vmem:[#allocation2 + $0xe8] sm:$0xff] }
  0xbd   :  { %981 = vrcp.f32 %v257_v55  ;;  %v129_v0 = vpop.xlane.xlu0 %128  ;;  %v1290_v35 = vpop.xlane.xlu1 %131 }
  0xbe   :  { %v964_v2 = vpop.eup %963  ;;  %983 = vrcp.f32 %v258_v60  ;;  %v1286_v11 = vmul.f32 -1.442695, %v129_v0 }
  0xbf   :  { %v966_v6 = vpop.eup %965  ;;  %v259_v10 = vadd.f32 1.0, %v964_v2  ;;  %985 = vpow2.f32 %v931_v56  ;;  %v368_v2 = vld [vmem:[#allocation2 + $0x110] sm:$0xff] }
  0xc0   :  { %v968_v12 = vpop.eup %967  ;;  %v523_v13 = vmul.f32 %v966_v6, %v334_v51  ;;  %v524_v14 = vmul.f32 %v966_v6, %v335_v52  ;;  %v525_v15 = vmul.f32 %v966_v6, %v336_v53  ;;  %v526_v16 = vmul.f32 %v966_v6, %v337_v54  ;;  %v364_v51 = vld [vmem:[#allocation2 + $0xf0] sm:$0xff] }
  0xc1   :  { %v970_v20 = vpop.eup %969  ;;  %v527_v21 = vmul.f32 %v966_v6, %v338_v57  ;;  %v528_v22 = vmul.f32 %v966_v6, %v339_v58  ;;  %v529_v23 = vmul.f32 %v966_v6, %v340_v59  ;;  %v537_v24 = vmul.f32 %v968_v12, %v348_v61  ;;  %v1292_v36 = vpop.xlane.xlu0 %134  ;;  %v365_v57 = vld [vmem:[#allocation2 + $0xf8] sm:$0xff]  ;;  %v366_v58 = vld [vmem:[#allocation2 + $0x100] sm:$0xff]  ;;  %v367_v59 = vld [vmem:[#allocation2 + $0x108] sm:$0xff] }
  0xc2   :  { %v1288_v28 = vpop.eup %971  ;;  %712 = vst [vmem:[#allocation5] sm:$0xff] %v523_v13  ;;  %713 = vst [vmem:[#allocation5 + $0x8] sm:$0xff] %v524_v14  ;;  %v538_v1 = vmul.f32 %v968_v12, %v349_v62  ;;  %v539_v29 = vmul.f32 %v968_v12, %v350_v63  ;;  %v540_v30 = vmul.f32 %v968_v12, %v351_v3  ;;  %987 = vrcp.f32 %v259_v10  ;;  %v369_v3 = vld [vmem:[#allocation2 + $0x118] sm:$0xff] }
  0xc3   :  { %714 = vst [vmem:[#allocation5 + $0x10] sm:$0xff] %v525_v15  ;;  %715 = vst [vmem:[#allocation5 + $0x18] sm:$0xff] %v526_v16  ;;  %v541_v31 = vmul.f32 %v968_v12, %v352_v4  ;;  %v974_v37 = vpop.eup %973  ;;  %v542_v38 = vmul.f32 %v968_v12, %v353_v5  ;;  %v543_v39 = vmul.f32 %v968_v12, %v354_v7  ;;  %v260_v43 = vadd.f32 1.0, %v970_v20  ;;  %v370_v4 = vld [vmem:[#allocation2 + $0x120] sm:$0xff]  ;;  %v373_v10 = vld [vmem:[#allocation2 + $0x138] sm:$0xff]  ;;  %v1302_v20 = vpop.xlane.xlu1 %137 }
  0xc4   :  { %716 = vst [vmem:[#allocation5 + $0x20] sm:$0xff] %v527_v21  ;;  %717 = vst [vmem:[#allocation5 + $0x28] sm:$0xff] %v528_v22  ;;  %v976_v44 = vpop.eup %975  ;;  %v530_v45 = vmul.f32 %v974_v37, %v341_v8  ;;  %v531_v46 = vmul.f32 %v974_v37, %v342_v9  ;;  %v532_v47 = vmul.f32 %v974_v37, %v343_v17  ;;  %v371_v8 = vld [vmem:[#allocation2 + $0x128] sm:$0xff]  ;;  %v372_v9 = vld [vmem:[#allocation2 + $0x130] sm:$0xff]  ;;  %v261_v12 = vadd.f32 1.0, %v1288_v28 }
  0xc5   :  { %719 = vst.msk [vmem:[#allocation5 + $0x30] sm:$0xff] %vm718_vm1, %v529_v23  ;;  %727 = vst [vmem:[#allocation5 + $0x70] sm:$0xff] %v537_v24  ;;  %v533_v48 = vmul.f32 %v974_v37, %v344_v18  ;;  %v1295_v52 = vpop.eup %977  ;;  %v534_v53 = vmul.f32 %v974_v37, %v345_v19  ;;  %v535_v54 = vmul.f32 %v974_v37, %v346_v25  ;;  %989 = vrcp.f32 %v260_v43  ;;  %v374_v18 = vld [vmem:[#allocation2 + $0x140] sm:$0xff]  ;;  %v375_v19 = vld [vmem:[#allocation2 + $0x148] sm:$0xff]  ;;  %v1304_v21 = vpop.xlane.xlu0 %140 }
  0xc6   :  { %728 = vst [vmem:[#allocation5 + $0x78] sm:$0xff] %v538_v1  ;;  %729 = vst [vmem:[#allocation5 + $0x80] sm:$0xff] %v539_v29  ;;  %v536_v55 = vmul.f32 %v974_v37, %v347_v26  ;;  %v544_v56 = vmul.f32 %v976_v44, %v355_v27  ;;  %v1298_v60 = vpop.eup %979  ;;  %v545_v61 = vmul.f32 %v976_v44, %v356_v32  ;;  %v379_v37 = vld [vmem:[#allocation2 + $0x168] sm:$0xff]  ;;  %991 = vrcp.f32 %v261_v12 }
  0xc7   :  { %730 = vst [vmem:[#allocation5 + $0x88] sm:$0xff] %v540_v30  ;;  %731 = vst [vmem:[#allocation5 + $0x90] sm:$0xff] %v541_v31  ;;  %v546_v62 = vmul.f32 %v976_v44, %v357_v33  ;;  %v547_v63 = vmul.f32 %v976_v44, %v358_v34  ;;  %v548_v0 = vmul.f32 %v976_v44, %v359_v40  ;;  %v982_v5 = vpop.eup %981  ;;  %v376_v30 = vld [vmem:[#allocation2 + $0x150] sm:$0xff]  ;;  %v377_v33 = vld [vmem:[#allocation2 + $0x158] sm:$0xff]  ;;  %993 = vpow2.f32 %v1286_v11 }
  0xc8   :  { %732 = vst [vmem:[#allocation5 + $0x98] sm:$0xff] %v542_v38  ;;  %733 = vst.msk [vmem:[#allocation5 + $0xa0] sm:$0xff] %vm718_vm1, %v543_v39  ;;  %v549_v6 = vmul.f32 %v976_v44, %v360_v41  ;;  %v550_v7 = vmul.f32 %v976_v44, %v361_v42  ;;  %v984_v13 = vpop.eup %983  ;;  %v551_v14 = vmul.f32 %v982_v5, %v362_v49  ;;  %v378_v34 = vld [vmem:[#allocation2 + $0x160] sm:$0xff]  ;;  %v262_v38 = vadd.f32 1.0, %v1295_v52  ;;  %v380_v39 = vld [vmem:[#allocation2 + $0x170] sm:$0xff]  ;;  %v144_v52 = vpop.xlane.xlu1 %143 }
  0xc9   :  { %720 = vst [vmem:[#allocation5 + $0x38] sm:$0xff] %v530_v45  ;;  %721 = vst [vmem:[#allocation5 + $0x40] sm:$0xff] %v531_v46  ;;  %v552_v15 = vmul.f32 %v982_v5, %v363_v50  ;;  %v553_v16 = vmul.f32 %v982_v5, %v364_v51  ;;  %v554_v17 = vmul.f32 %v982_v5, %v365_v57  ;;  %v986_v22 = vpop.eup %985  ;;  %v381_v40 = vld [vmem:[#allocation2 + $0x178] sm:$0xff]  ;;  %v382_v41 = vld [vmem:[#allocation2 + $0x180] sm:$0xff]  ;;  %v263_v42 = vadd.f32 1.0, %v1298_v60 }
  0xca   :  { %722 = vst [vmem:[#allocation5 + $0x48] sm:$0xff] %v532_v47  ;;  %723 = vst [vmem:[#allocation5 + $0x50] sm:$0xff] %v533_v48  ;;  %v555_v23 = vmul.f32 %v982_v5, %v366_v58  ;;  %v556_v24 = vmul.f32 %v982_v5, %v367_v59  ;;  %v557_v25 = vmul.f32 %v982_v5, %v368_v2  ;;  %v264_v43 = vadd.f32 1.0, %v986_v22  ;;  %v383_v51 = vld [vmem:[#allocation2 + $0x188] sm:$0xff]  ;;  %v384_v11 = vld [vmem:[#allocation2 + $0x190] sm:$0xff] }
  0xcb   :  { %724 = vst [vmem:[#allocation5 + $0x58] sm:$0xff] %v534_v53  ;;  %725 = vst [vmem:[#allocation5 + $0x60] sm:$0xff] %v535_v54  ;;  %v558_v26 = vmul.f32 %v984_v13, %v369_v3  ;;  %v559_v27 = vmul.f32 %v984_v13, %v370_v4  ;;  %v560_v28 = vmul.f32 %v984_v13, %v371_v8  ;;  %995 = vrcp.f32 %v262_v38  ;;  %v147_v53 = vpop.xlane.xlu0 %146  ;;  %v385_v57 = vld [vmem:[#allocation2 + $0x198] sm:$0xff]  ;;  %v386_v58 = vld [vmem:[#allocation2 + $0x1a0] sm:$0xff] }
  0xcc   :  { %726 = vst.msk [vmem:[#allocation5 + $0x68] sm:$0xff] %vm718_vm1, %v536_v55  ;;  %734 = vst [vmem:[#allocation5 + $0xa8] sm:$0xff] %v544_v56  ;;  %v561_v1 = vmul.f32 %v984_v13, %v372_v9  ;;  %v562_v29 = vmul.f32 %v984_v13, %v373_v10  ;;  %v563_v31 = vmul.f32 %v984_v13, %v374_v18  ;;  %v988_v44 = vpop.eup %987  ;;  %v933_v45 = vmul.f32 -1.442695, %v1290_v35  ;;  %v387_v35 = vld [vmem:[#allocation2 + $0x1a8] sm:$0xff]  ;;  %v389_v59 = vld [vmem:[#allocation2 + $0x1b8] sm:$0xff] }
  0xcd   :  { %735 = vst [vmem:[#allocation5 + $0xb0] sm:$0xff] %v545_v61  ;;  %736 = vst [vmem:[#allocation5 + $0xb8] sm:$0xff] %v546_v62  ;;  %v564_v32 = vmul.f32 %v984_v13, %v375_v19  ;;  %v934_v46 = vmul.f32 -1.442695, %v1292_v36  ;;  %v565_v47 = vmul.f32 %v988_v44, %v376_v30  ;;  %v566_v48 = vmul.f32 %v988_v44, %v377_v33  ;;  %v388_v36 = vld [vmem:[#allocation2 + $0x1b0] sm:$0xff]  ;;  %v390_v62 = vld [vmem:[#allocation2 + $0x1c0] sm:$0xff] }
  0xce   :  { %737 = vst [vmem:[#allocation5 + $0xc0] sm:$0xff] %v547_v63  ;;  %738 = vst [vmem:[#allocation5 + $0xc8] sm:$0xff] %v548_v0  ;;  %v567_v49 = vmul.f32 %v988_v44, %v378_v34  ;;  %v568_v50 = vmul.f32 %v988_v44, %v379_v37  ;;  %v569_v54 = vmul.f32 %v988_v44, %v380_v39  ;;  %997 = vrcp.f32 %v263_v42  ;;  %v391_v63 = vld [vmem:[#allocation2 + $0x1c8] sm:$0xff]  ;;  %v392_v0 = vld [vmem:[#allocation2 + $0x1d0] sm:$0xff] }
  0xcf   :  { %739 = vst [vmem:[#allocation5 + $0xd0] sm:$0xff] %v549_v6  ;;  %740 = vst.msk [vmem:[#allocation5 + $0xd8] sm:$0xff] %vm718_vm1, %v550_v7  ;;  %v570_v55 = vmul.f32 %v988_v44, %v381_v40  ;;  %v571_v56 = vmul.f32 %v988_v44, %v382_v41  ;;  %999 = vrcp.f32 %v264_v43  ;;  %v935_v60 = vmul.f32 -1.442695, %v1302_v20  ;;  %v990_v61 = vpop.eup %989  ;;  %v393_v7 = vld [vmem:[#allocation2 + $0x1d8] sm:$0xff]  ;;  %v394_v8 = vld [vmem:[#allocation2 + $0x1e0] sm:$0xff]  ;;  %v1317_v20 = vpop.xlane.xlu1 %149 }
  0xd0   :  { %741 = vst [vmem:[#allocation5 + $0xe0] sm:$0xff] %v551_v14  ;;  %742 = vst [vmem:[#allocation5 + $0xe8] sm:$0xff] %v552_v15  ;;  %1001 = vpow2.f32 %v933_v45  ;;  %v936_v2 = vmul.f32 -1.442695, %v1304_v21  ;;  %v572_v3 = vmul.f32 %v990_v61, %v383_v51  ;;  %v573_v4 = vmul.f32 %v990_v61, %v384_v11  ;;  %v395_v9 = vld [vmem:[#allocation2 + $0x1e8] sm:$0xff]  ;;  %v396_v14 = vld [vmem:[#allocation2 + $0x1f0] sm:$0xff]  ;;  %v1319_v21 = vpop.xlane.xlu0 %152  ;;  %v992_v22 = vpop.eup %991 }
  0xd1   :  { %743 = vst [vmem:[#allocation5 + $0xf0] sm:$0xff] %v553_v16  ;;  %744 = vst [vmem:[#allocation5 + $0xf8] sm:$0xff] %v554_v17  ;;  %v574_v5 = vmul.f32 %v990_v61, %v385_v57  ;;  %v575_v6 = vmul.f32 %v990_v61, %v386_v58  ;;  %v576_v10 = vmul.f32 %v990_v61, %v387_v35  ;;  %v397_v15 = vld [vmem:[#allocation2 + $0x1f8] sm:$0xff]  ;;  %v398_v16 = vld [vmem:[#allocation2 + $0x200] sm:$0xff]  ;;  %1003 = vpow2.f32 %v934_v46 }
  0xd2   :  { %745 = vst [vmem:[#allocation5 + $0x100] sm:$0xff] %v555_v23  ;;  %746 = vst [vmem:[#allocation5 + $0x108] sm:$0xff] %v556_v24  ;;  %v577_v12 = vmul.f32 %v990_v61, %v388_v36  ;;  %v578_v13 = vmul.f32 %v990_v61, %v389_v59  ;;  %v399_v17 = vld [vmem:[#allocation2 + $0x208] sm:$0xff]  ;;  %v400_v18 = vld [vmem:[#allocation2 + $0x210] sm:$0xff]  ;;  %1005 = vpow2.f32 %v935_v60  ;;  %v582_v30 = vmul.f32 %v992_v22, %v393_v7 }
  0xd3   :  { %747 = vst.msk [vmem:[#allocation5 + $0x110] sm:$0xff] %vm718_vm1, %v557_v25  ;;  %748 = vst [vmem:[#allocation5 + $0x118] sm:$0xff] %v558_v26  ;;  %v401_v19 = vld [vmem:[#allocation2 + $0x218] sm:$0xff]  ;;  %v402_v23 = vld [vmem:[#allocation2 + $0x220] sm:$0xff]  ;;  %1007 = vpow2.f32 %v936_v2  ;;  %v1322_v25 = vmul.f32 -1.442695, %v144_v52  ;;  %v583_v37 = vmul.f32 %v992_v22, %v394_v8  ;;  %v584_v38 = vmul.f32 %v992_v22, %v395_v9 }
  0xd4   :  { %749 = vst [vmem:[#allocation5 + $0x120] sm:$0xff] %v559_v27  ;;  %750 = vst [vmem:[#allocation5 + $0x128] sm:$0xff] %v560_v28  ;;  %v403_v24 = vld [vmem:[#allocation2 + $0x228] sm:$0xff]  ;;  %v1324_v26 = vmul.f32 -1.442695, %v147_v53  ;;  %v994_v27 = vpop.eup %993  ;;  %v579_v28 = vmul.f32 %v992_v22, %v390_v62  ;;  %v406_v33 = vld [vmem:[#allocation2 + $0x240] sm:$0xff]  ;;  %v585_v39 = vmul.f32 %v992_v22, %v396_v14  ;;  %v156_v62 = vpop.xlane.xlu1 %155 }
  0xd5   :  { %751 = vst [vmem:[#allocation5 + $0x130] sm:$0xff] %v561_v1  ;;  %752 = vst [vmem:[#allocation5 + $0x138] sm:$0xff] %v562_v29  ;;  %v580_v1 = vmul.f32 %v992_v22, %v391_v63  ;;  %v581_v29 = vmul.f32 %v992_v22, %v392_v0  ;;  %v996_v34 = vpop.eup %995  ;;  %v407_v40 = vld [vmem:[#allocation2 + $0x248] sm:$0xff]  ;;  %v408_v41 = vld [vmem:[#allocation2 + $0x250] sm:$0xff]  ;;  %v265_v43 = vadd.f32 1.0, %v994_v27  ;;  %v159_v63 = vpop.xlane.xlu0 %158 }
  0xd6   :  { %753 = vst [vmem:[#allocation5 + $0x140] sm:$0xff] %v563_v31  ;;  %754 = vst.msk [vmem:[#allocation5 + $0x148] sm:$0xff] %vm718_vm1, %v564_v32  ;;  %v404_v31 = vld [vmem:[#allocation2 + $0x230] sm:$0xff]  ;;  %v405_v32 = vld [vmem:[#allocation2 + $0x238] sm:$0xff]  ;;  %v586_v44 = vmul.f32 %v996_v34, %v397_v15  ;;  %v587_v45 = vmul.f32 %v996_v34, %v398_v16  ;;  %v588_v46 = vmul.f32 %v996_v34, %v399_v17 }
  0xd7   :  { %755 = vst [vmem:[#allocation5 + $0x150] sm:$0xff] %v565_v47  ;;  %756 = vst [vmem:[#allocation5 + $0x158] sm:$0xff] %v566_v48  ;;  %v409_v42 = vld [vmem:[#allocation2 + $0x258] sm:$0xff]  ;;  %v589_v47 = vmul.f32 %v996_v34, %v400_v18  ;;  %v410_v48 = vld [vmem:[#allocation2 + $0x260] sm:$0xff]  ;;  %v590_v52 = vmul.f32 %v996_v34, %v401_v19  ;;  %v591_v53 = vmul.f32 %v996_v34, %v402_v23  ;;  %1009 = vrcp.f32 %v265_v43 }
  0xd8   :  { %757 = vst [vmem:[#allocation5 + $0x160] sm:$0xff] %v567_v49  ;;  %758 = vst [vmem:[#allocation5 + $0x168] sm:$0xff] %v568_v50  ;;  %v411_v49 = vld [vmem:[#allocation2 + $0x268] sm:$0xff]  ;;  %v412_v50 = vld [vmem:[#allocation2 + $0x270] sm:$0xff]  ;;  %v998_v51 = vpop.eup %997  ;;  %1011 = vpow2.f32 %v1322_v25  ;;  %v939_v19 = vmul.f32 -1.442695, %v1317_v20 }
  0xd9   :  { %759 = vst [vmem:[#allocation5 + $0x170] sm:$0xff] %v569_v54  ;;  %760 = vst [vmem:[#allocation5 + $0x178] sm:$0xff] %v570_v55  ;;  %v592_v54 = vmul.f32 %v996_v34, %v403_v24  ;;  %v413_v55 = vld [vmem:[#allocation2 + $0x278] sm:$0xff]  ;;  %v415_v11 = vld [vmem:[#allocation2 + $0x288] sm:$0xff]  ;;  %v1000_v57 = vpop.eup %999  ;;  %v593_v58 = vmul.f32 %v998_v51, %v404_v31  ;;  %v594_v35 = vmul.f32 %v998_v51, %v405_v32  ;;  %1013 = vpow2.f32 %v1324_v26  ;;  %v162_v24 = vpop.xlane.xlu1 %161 }
  0xda   :  { %761 = vst.msk [vmem:[#allocation5 + $0x180] sm:$0xff] %vm718_vm1, %v571_v56  ;;  %762 = vst [vmem:[#allocation5 + $0x188] sm:$0xff] %v572_v3  ;;  %v414_v56 = vld [vmem:[#allocation2 + $0x280] sm:$0xff]  ;;  %v595_v36 = vmul.f32 %v998_v51, %v406_v33  ;;  %v596_v59 = vmul.f32 %v998_v51, %v407_v40  ;;  %v416_v60 = vld [vmem:[#allocation2 + $0x290] sm:$0xff]  ;;  %v1002_v0 = vpop.eup %1001  ;;  %v597_v2 = vmul.f32 %v998_v51, %v408_v41  ;;  %v165_v25 = vpop.xlane.xlu0 %164  ;;  %v941_v32 = vmul.f32 -1.442695, %v156_v62 }
  0xdb   :  { %763 = vst [vmem:[#allocation5 + $0x190] sm:$0xff] %v573_v4  ;;  %764 = vst [vmem:[#allocation5 + $0x198] sm:$0xff] %v574_v5  ;;  %v417_v61 = vld [vmem:[#allocation2 + $0x298] sm:$0xff]  ;;  %v598_v3 = vmul.f32 %v998_v51, %v409_v42  ;;  %v599_v4 = vmul.f32 %v998_v51, %v410_v48  ;;  %v600_v5 = vmul.f32 %v1000_v57, %v411_v49  ;;  %v266_v14 = vadd.f32 1.0, %v1002_v0  ;;  %v418_v22 = vld [vmem:[#allocation2 + $0x2a0] sm:$0xff] }
  0xdc   :  { %765 = vst [vmem:[#allocation5 + $0x1a0] sm:$0xff] %v575_v6  ;;  %766 = vst [vmem:[#allocation5 + $0x1a8] sm:$0xff] %v576_v10  ;;  %v601_v6 = vmul.f32 %v1000_v57, %v412_v50  ;;  %v602_v7 = vmul.f32 %v1000_v57, %v413_v55  ;;  %v603_v8 = vmul.f32 %v1000_v57, %v414_v56  ;;  %v1004_v10 = vpop.eup %1003  ;;  %v419_v27 = vld [vmem:[#allocation2 + $0x2a8] sm:$0xff]  ;;  %v422_v26 = vld [vmem:[#allocation2 + $0x2c0] sm:$0xff]  ;;  %v942_v34 = vmul.f32 -1.442695, %v159_v63 }
  0xdd   :  { %767 = vst [vmem:[#allocation5 + $0x1b0] sm:$0xff] %v577_v12  ;;  %768 = vst.msk [vmem:[#allocation5 + $0x1b8] sm:$0xff] %vm718_vm1, %v578_v13  ;;  %v604_v9 = vmul.f32 %v1000_v57, %v415_v11  ;;  %v605_v12 = vmul.f32 %v1000_v57, %v416_v60  ;;  %v606_v13 = vmul.f32 %v1000_v57, %v417_v61  ;;  %v1006_v15 = vpop.eup %1005  ;;  %v267_v16 = vadd.f32 1.0, %v1004_v10  ;;  %v424_v31 = vld [vmem:[#allocation2 + $0x2d0] sm:$0xff]  ;;  %v429_v48 = vld [vmem:[#allocation2 + $0x2f8] sm:$0xff] }
  0xde   :  { %769 = vst [vmem:[#allocation5 + $0x1c0] sm:$0xff] %v579_v28  ;;  %770 = vst [vmem:[#allocation5 + $0x1c8] sm:$0xff] %v580_v1  ;;  %v1008_v17 = vpop.eup %1007  ;;  %1015 = vrcp.f32 %v266_v14  ;;  %v268_v18 = vadd.f32 1.0, %v1006_v15  ;;  %v420_v28 = vld [vmem:[#allocation2 + $0x2b0] sm:$0xff]  ;;  %v421_v1 = vld [vmem:[#allocation2 + $0x2b8] sm:$0xff] }
  0xdf   :  { %771 = vst [vmem:[#allocation5 + $0x1d0] sm:$0xff] %v581_v29  ;;  %772 = vst [vmem:[#allocation5 + $0x1d8] sm:$0xff] %v582_v30  ;;  %1017 = vrcp.f32 %v267_v16  ;;  %v269_v23 = vadd.f32 1.0, %v1008_v17  ;;  %v940_v29 = vmul.f32 -1.442695, %v1319_v21  ;;  %v423_v30 = vld [vmem:[#allocation2 + $0x2c8] sm:$0xff] }
  0xe0   :  { %773 = vst [vmem:[#allocation5 + $0x1e0] sm:$0xff] %v583_v37  ;;  %774 = vst [vmem:[#allocation5 + $0x1e8] sm:$0xff] %v584_v38  ;;  %1019 = vrcp.f32 %v268_v18  ;;  %v943_v20 = vmul.f32 -1.442695, %v162_v24  ;;  %v944_v37 = vmul.f32 -1.442695, %v165_v25 }
  0xe1   :  { %775 = vst.msk [vmem:[#allocation5 + $0x1f0] sm:$0xff] %vm718_vm1, %v585_v39  ;;  %776 = vst [vmem:[#allocation5 + $0x1f8] sm:$0xff] %v586_v44  ;;  %1021 = vrcp.f32 %v269_v23  ;;  %v1010_v33 = vpop.eup %1009  ;;  %v427_v21 = vld [vmem:[#allocation2 + $0x2e8] sm:$0xff]  ;;  %v430_v49 = vld [vmem:[#allocation2 + $0x300] sm:$0xff] }
  0xe2   :  { %777 = vst [vmem:[#allocation5 + $0x200] sm:$0xff] %v587_v45  ;;  %778 = vst [vmem:[#allocation5 + $0x208] sm:$0xff] %v588_v46  ;;  %1023 = vpow2.f32 %v939_v19  ;;  %v607_v38 = vmul.f32 %v1010_v33, %v418_v22  ;;  %v608_v39 = vmul.f32 %v1010_v33, %v419_v27  ;;  %v609_v40 = vmul.f32 %v1010_v33, %v420_v28  ;;  %v425_v45 = vld [vmem:[#allocation2 + $0x2d8] sm:$0xff]  ;;  %v426_v46 = vld [vmem:[#allocation2 + $0x2e0] sm:$0xff]  ;;  %v1012_v51 = vpop.eup %1011 }
  0xe3   :  { %779 = vst [vmem:[#allocation5 + $0x210] sm:$0xff] %v589_v47  ;;  %780 = vst [vmem:[#allocation5 + $0x218] sm:$0xff] %v590_v52  ;;  %v610_v41 = vmul.f32 %v1010_v33, %v421_v1  ;;  %v611_v42 = vmul.f32 %v1010_v33, %v422_v26  ;;  %v612_v43 = vmul.f32 %v1010_v33, %v423_v30  ;;  %v428_v47 = vld [vmem:[#allocation2 + $0x2f0] sm:$0xff]  ;;  %1025 = vpow2.f32 %v940_v29  ;;  %v431_v50 = vld [vmem:[#allocation2 + $0x308] sm:$0xff]  ;;  %v1014_v55 = vpop.eup %1013 }
  0xe4   :  { %781 = vst [vmem:[#allocation5 + $0x220] sm:$0xff] %v591_v53  ;;  %782 = vst.msk [vmem:[#allocation5 + $0x228] sm:$0xff] %vm718_vm1, %v592_v54  ;;  %v613_v44 = vmul.f32 %v1010_v33, %v424_v31  ;;  %1027 = vpow2.f32 %v941_v32  ;;  %v432_v52 = vld [vmem:[#allocation2 + $0x310] sm:$0xff]  ;;  %v433_v53 = vld [vmem:[#allocation2 + $0x318] sm:$0xff]  ;;  %v1335_v60 = vadd.f32 1.0, %v1012_v51  ;;  %v1337_v61 = vadd.f32 1.0, %v1014_v55 }
  0xe5   :  { %783 = vst [vmem:[#allocation5 + $0x230] sm:$0xff] %v593_v58  ;;  %784 = vst [vmem:[#allocation5 + $0x238] sm:$0xff] %v594_v35  ;;  %v434_v54 = vld [vmem:[#allocation2 + $0x320] sm:$0xff]  ;;  %1029 = vpow2.f32 %v942_v34  ;;  %v435_v56 = vld [vmem:[#allocation2 + $0x328] sm:$0xff] }
  0xe6   :  { %785 = vst [vmem:[#allocation5 + $0x240] sm:$0xff] %v595_v36  ;;  %786 = vst [vmem:[#allocation5 + $0x248] sm:$0xff] %v596_v59  ;;  %v436_v11 = vld [vmem:[#allocation2 + $0x330] sm:$0xff]  ;;  %v437_v57 = vld [vmem:[#allocation2 + $0x338] sm:$0xff]  ;;  %1031 = vpow2.f32 %v943_v20 }
  0xe7   :  { %787 = vst [vmem:[#allocation5 + $0x250] sm:$0xff] %v597_v2  ;;  %788 = vst [vmem:[#allocation5 + $0x258] sm:$0xff] %v598_v3  ;;  %v438_v35 = vld [vmem:[#allocation2 + $0x340] sm:$0xff]  ;;  %v439_v36 = vld [vmem:[#allocation2 + $0x348] sm:$0xff]  ;;  %1033 = vpow2.f32 %v944_v37 }
  0xe8   :  { %789 = vst.msk [vmem:[#allocation5 + $0x260] sm:$0xff] %vm718_vm1, %v599_v4  ;;  %790 = vst [vmem:[#allocation5 + $0x268] sm:$0xff] %v600_v5  ;;  %v1016_v58 = vpop.eup %1015  ;;  %v440_v59 = vld [vmem:[#allocation2 + $0x350] sm:$0xff]  ;;  %v441_v4 = vld [vmem:[#allocation2 + $0x358] sm:$0xff]  ;;  %1035 = vrcp.f32 %v1335_v60 }
  0xe9   :  { %791 = vst [vmem:[#allocation5 + $0x270] sm:$0xff] %v601_v6  ;;  %792 = vst [vmem:[#allocation5 + $0x278] sm:$0xff] %v602_v7  ;;  %v1018_v62 = vpop.eup %1017  ;;  %v614_v63 = vmul.f32 %v1016_v58, %v425_v45  ;;  %v615_v0 = vmul.f32 %v1016_v58, %v426_v46  ;;  %v616_v2 = vmul.f32 %v1016_v58, %v427_v21  ;;  %v442_v5 = vld [vmem:[#allocation2 + $0x360] sm:$0xff]  ;;  %v443_v6 = vld [vmem:[#allocation2 + $0x368] sm:$0xff]  ;;  %1037 = vrcp.f32 %v1337_v61 }
  0xea   :  { %793 = vst [vmem:[#allocation5 + $0x280] sm:$0xff] %v603_v8  ;;  %794 = vst [vmem:[#allocation5 + $0x288] sm:$0xff] %v604_v9  ;;  %v617_v3 = vmul.f32 %v1016_v58, %v428_v47  ;;  %v1020_v7 = vpop.eup %1019  ;;  %v618_v8 = vmul.f32 %v1016_v58, %v429_v48  ;;  %v619_v9 = vmul.f32 %v1016_v58, %v430_v49  ;;  %v445_v14 = vld [vmem:[#allocation2 + $0x378] sm:$0xff]  ;;  %v446_v15 = vld [vmem:[#allocation2 + $0x380] sm:$0xff] }
  0xeb   :  { %795 = vst [vmem:[#allocation5 + $0x290] sm:$0xff] %v605_v12  ;;  %796 = vst.msk [vmem:[#allocation5 + $0x298] sm:$0xff] %vm718_vm1, %v606_v13  ;;  %v620_v10 = vmul.f32 %v1016_v58, %v431_v50  ;;  %v621_v12 = vmul.f32 %v1018_v62, %v432_v52  ;;  %v444_v13 = vld [vmem:[#allocation2 + $0x370] sm:$0xff]  ;;  %v1022_v16 = vpop.eup %1021  ;;  %v622_v17 = vmul.f32 %v1018_v62, %v433_v53  ;;  %v447_v23 = vld [vmem:[#allocation2 + $0x388] sm:$0xff] }
  0xec   :  { %797 = vst [vmem:[#allocation5 + $0x2a0] sm:$0xff] %v607_v38  ;;  %798 = vst [vmem:[#allocation5 + $0x2a8] sm:$0xff] %v608_v39  ;;  %v623_v18 = vmul.f32 %v1018_v62, %v434_v54  ;;  %v624_v19 = vmul.f32 %v1018_v62, %v435_v56  ;;  %v625_v22 = vmul.f32 %v1018_v62, %v436_v11  ;;  %v448_v24 = vld [vmem:[#allocation2 + $0x390] sm:$0xff]  ;;  %v449_v25 = vld [vmem:[#allocation2 + $0x398] sm:$0xff]  ;;  %v1024_v27 = vpop.eup %1023  ;;  %v168_v54 = vpop.xlane.xlu1 %167 }
  0xed   :  { %799 = vst [vmem:[#allocation5 + $0x2b0] sm:$0xff] %v609_v40  ;;  %800 = vst [vmem:[#allocation5 + $0x2b8] sm:$0xff] %v610_v41  ;;  %v626_v28 = vmul.f32 %v1018_v62, %v437_v57  ;;  %v627_v1 = vmul.f32 %v1018_v62, %v438_v35  ;;  %v628_v29 = vmul.f32 %v1020_v7, %v439_v36  ;;  %v450_v30 = vld [vmem:[#allocation2 + $0x3a0] sm:$0xff]  ;;  %v451_v31 = vld [vmem:[#allocation2 + $0x3a8] sm:$0xff]  ;;  %v1026_v38 = vpop.eup %1025  ;;  %v272_v48 = vadd.f32 1.0, %v1024_v27  ;;  %v171_v56 = vpop.xlane.xlu0 %170 }
  0xee   :  { %801 = vst [vmem:[#allocation5 + $0x2c0] sm:$0xff] %v611_v42  ;;  %802 = vst [vmem:[#allocation5 + $0x2c8] sm:$0xff] %v612_v43  ;;  %v629_v26 = vmul.f32 %v1020_v7, %v440_v59  ;;  %v452_v32 = vld [vmem:[#allocation2 + $0x3b0] sm:$0xff]  ;;  %v630_v33 = vmul.f32 %v1020_v7, %v441_v4  ;;  %v631_v34 = vmul.f32 %v1020_v7, %v442_v5  ;;  %v1028_v43 = vpop.eup %1027  ;;  %v273_v49 = vadd.f32 1.0, %v1026_v38  ;;  %v453_v58 = vld [vmem:[#allocation2 + $0x3b8] sm:$0xff] }
  0xef   :  { %803 = vst.msk [vmem:[#allocation5 + $0x2d0] sm:$0xff] %vm718_vm1, %v613_v44  ;;  %804 = vst [vmem:[#allocation5 + $0x2d8] sm:$0xff] %v614_v63  ;;  %v632_v20 = vmul.f32 %v1020_v7, %v443_v6  ;;  %v633_v37 = vmul.f32 %v1020_v7, %v444_v13  ;;  %v634_v39 = vmul.f32 %v1020_v7, %v445_v14  ;;  %v1030_v47 = vpop.eup %1029  ;;  %v274_v51 = vadd.f32 1.0, %v1028_v43  ;;  %v454_v35 = vld [vmem:[#allocation2 + $0x3c0] sm:$0xff]  ;;  %v455_v36 = vld [vmem:[#allocation2 + $0x3c8] sm:$0xff] }
  0xf0   :  { %805 = vst [vmem:[#allocation5 + $0x2e0] sm:$0xff] %v615_v0  ;;  %806 = vst [vmem:[#allocation5 + $0x2e8] sm:$0xff] %v616_v2  ;;  %v635_v40 = vmul.f32 %v1022_v16, %v446_v15  ;;  %v636_v41 = vmul.f32 %v1022_v16, %v447_v23  ;;  %v637_v42 = vmul.f32 %v1022_v16, %v448_v24  ;;  %v1032_v50 = vpop.eup %1031  ;;  %1039 = vrcp.f32 %v272_v48  ;;  %v456_v59 = vld [vmem:[#allocation2 + $0x3d0] sm:$0xff]  ;;  %v457_v62 = vld [vmem:[#allocation2 + $0x3d8] sm:$0xff] }
  0xf1   :  { %807 = vst [vmem:[#allocation5 + $0x2f0] sm:$0xff] %v617_v3  ;;  %808 = vst [vmem:[#allocation5 + $0x2f8] sm:$0xff] %v618_v8  ;;  %v638_v44 = vmul.f32 %v1022_v16, %v449_v25  ;;  %v639_v45 = vmul.f32 %v1022_v16, %v450_v30  ;;  %v640_v46 = vmul.f32 %v1022_v16, %v451_v31  ;;  %v1034_v52 = vpop.eup %1033  ;;  %v275_v53 = vadd.f32 1.0, %v1030_v47  ;;  %v458_v63 = vld [vmem:[#allocation2 + $0x3e0] sm:$0xff]  ;;  %v459_v61 = vld [vmem:[#allocation2 + $0x3e8] sm:$0xff] }
  0xf2   :  { %809 = vst [vmem:[#allocation5 + $0x300] sm:$0xff] %v619_v9  ;;  %810 = vst.msk [vmem:[#allocation5 + $0x308] sm:$0xff] %vm718_vm1, %v620_v10  ;;  %v641_v21 = vmul.f32 %v1022_v16, %v452_v32  ;;  %1041 = vrcp.f32 %v273_v49  ;;  %v276_v55 = vadd.f32 1.0, %v1032_v50  ;;  %v277_v11 = vadd.f32 1.0, %v1034_v52  ;;  %v460_v0 = vld [vmem:[#allocation2 + $0x3f0] sm:$0xff]  ;;  %v461_v2 = vld [vmem:[#allocation2 + $0x3f8] sm:$0xff]  ;;  %v1036_v10 = vpop.eup %1035 }
  0xf3   :  { %811 = vst [vmem:[#allocation5 + $0x310] sm:$0xff] %v621_v12  ;;  %812 = vst [vmem:[#allocation5 + $0x318] sm:$0xff] %v622_v17  ;;  %1043 = vrcp.f32 %v274_v51  ;;  %v945_v57 = vmul.f32 -1.442695, %v168_v54  ;;  %v946_v60 = vmul.f32 -1.442695, %v171_v56  ;;  %v1038_v16 = vpop.eup %1037  ;;  %v642_v17 = vmul.f32 %v1036_v10, %v453_v58 }
  0xf4   :  { %813 = vst [vmem:[#allocation5 + $0x320] sm:$0xff] %v623_v18  ;;  %814 = vst [vmem:[#allocation5 + $0x328] sm:$0xff] %v624_v19  ;;  %1045 = vrcp.f32 %v275_v53  ;;  %v462_v3 = vld [vmem:[#allocation2 + $0x400] sm:$0xff]  ;;  %v463_v4 = vld [vmem:[#allocation2 + $0x408] sm:$0xff]  ;;  %v643_v18 = vmul.f32 %v1036_v10, %v454_v35  ;;  %v644_v19 = vmul.f32 %v1036_v10, %v455_v36  ;;  %v649_v30 = vmul.f32 %v1038_v16, %v460_v0 }
  0xf5   :  { %815 = vst [vmem:[#allocation5 + $0x330] sm:$0xff] %v625_v22  ;;  %816 = vst [vmem:[#allocation5 + $0x338] sm:$0xff] %v626_v28  ;;  %1047 = vrcp.f32 %v276_v55  ;;  %v464_v5 = vld [vmem:[#allocation2 + $0x410] sm:$0xff]  ;;  %v465_v6 = vld [vmem:[#allocation2 + $0x418] sm:$0xff]  ;;  %v645_v22 = vmul.f32 %v1036_v10, %v456_v59  ;;  %v651_v38 = vmul.f32 %v1038_v16, %v462_v3 }
  0xf6   :  { %817 = vst.msk [vmem:[#allocation5 + $0x340] sm:$0xff] %vm718_vm1, %v627_v1  ;;  %818 = vst [vmem:[#allocation5 + $0x348] sm:$0xff] %v628_v29  ;;  %1049 = vrcp.f32 %v277_v11  ;;  %v466_v7 = vld [vmem:[#allocation2 + $0x420] sm:$0xff]  ;;  %v467_v8 = vld [vmem:[#allocation2 + $0x428] sm:$0xff]  ;;  %v646_v1 = vmul.f32 %v1036_v10, %v457_v62  ;;  %v647_v29 = vmul.f32 %v1036_v10, %v458_v63 }
  0xf7   :  { %819 = vst [vmem:[#allocation5 + $0x350] sm:$0xff] %v629_v26  ;;  %820 = vst [vmem:[#allocation5 + $0x358] sm:$0xff] %v630_v33  ;;  %v468_v9 = vld [vmem:[#allocation2 + $0x430] sm:$0xff]  ;;  %1051 = vpow2.f32 %v945_v57  ;;  %v469_v12 = vld [vmem:[#allocation2 + $0x438] sm:$0xff]  ;;  %v648_v26 = vmul.f32 %v1036_v10, %v459_v61 }
  0xf8   :  { %821 = vst [vmem:[#allocation5 + $0x360] sm:$0xff] %v631_v34  ;;  %822 = vst [vmem:[#allocation5 + $0x368] sm:$0xff] %v632_v20  ;;  %v470_v13 = vld [vmem:[#allocation2 + $0x440] sm:$0xff]  ;;  %v471_v14 = vld [vmem:[#allocation2 + $0x448] sm:$0xff]  ;;  %1053 = vpow2.f32 %v946_v60 }
  0xf9   :  { %823 = vst [vmem:[#allocation5 + $0x370] sm:$0xff] %v633_v37  ;;  %824 = vst.msk [vmem:[#allocation5 + $0x378] sm:$0xff] %vm718_vm1, %v634_v39  ;;  %v472_v15 = vld [vmem:[#allocation2 + $0x450] sm:$0xff]  ;;  %v473_v23 = vld [vmem:[#allocation2 + $0x458] sm:$0xff]  ;;  %v650_v37 = vmul.f32 %v1038_v16, %v461_v2  ;;  %v652_v39 = vmul.f32 %v1038_v16, %v463_v4 }
  0xfa   :  { %825 = vst [vmem:[#allocation5 + $0x380] sm:$0xff] %v635_v40  ;;  %826 = vst [vmem:[#allocation5 + $0x388] sm:$0xff] %v636_v41  ;;  %v474_v24 = vld [vmem:[#allocation2 + $0x460] sm:$0xff]  ;;  %v475_v25 = vld [vmem:[#allocation2 + $0x468] sm:$0xff]  ;;  %v1040_v28 = vpop.eup %1039  ;;  %v653_v40 = vmul.f32 %v1038_v16, %v464_v5 }
  0xfb   :  { %827 = vst [vmem:[#allocation5 + $0x390] sm:$0xff] %v637_v42  ;;  %828 = vst [vmem:[#allocation5 + $0x398] sm:$0xff] %v638_v44  ;;  %v476_v27 = vld [vmem:[#allocation2 + $0x470] sm:$0xff]  ;;  %v477_v31 = vld [vmem:[#allocation2 + $0x478] sm:$0xff]  ;;  %v657_v47 = vmul.f32 %v1040_v28, %v468_v9  ;;  %v658_v52 = vmul.f32 %v1040_v28, %v469_v12  ;;  %v659_v53 = vmul.f32 %v1040_v28, %v470_v13 }
  0xfc   :  { %829 = vst [vmem:[#allocation5 + $0x3a0] sm:$0xff] %v639_v45  ;;  %830 = vst [vmem:[#allocation5 + $0x3a8] sm:$0xff] %v640_v46  ;;  %v478_v32 = vld [vmem:[#allocation2 + $0x480] sm:$0xff]  ;;  %v479_v33 = vld [vmem:[#allocation2 + $0x488] sm:$0xff]  ;;  %v1042_v20 = vpop.eup %1041  ;;  %v654_v45 = vmul.f32 %v1038_v16, %v465_v6  ;;  %v655_v46 = vmul.f32 %v1038_v16, %v466_v7  ;;  %v660_v54 = vmul.f32 %v1040_v28, %v471_v14 }
  0xfd   :  { %831 = vst.msk [vmem:[#allocation5 + $0x3b0] sm:$0xff] %vm718_vm1, %v641_v21  ;;  %v480_v34 = vld [vmem:[#allocation2 + $0x490] sm:$0xff]  ;;  %832 = vst [vmem:[#allocation5 + $0x3b8] sm:$0xff] %v642_v17  ;;  %v481_v41 = vld [vmem:[#allocation2 + $0x498] sm:$0xff]  ;;  %v656_v21 = vmul.f32 %v1040_v28, %v467_v8  ;;  %v1044_v51 = vpop.eup %1043  ;;  %v661_v55 = vmul.f32 %v1040_v28, %v472_v15  ;;  %v662_v35 = vmul.f32 %v1040_v28, %v473_v23 }
  0xfe   :  { %833 = vst [vmem:[#allocation5 + $0x3c0] sm:$0xff] %v643_v18  ;;  %834 = vst [vmem:[#allocation5 + $0x3c8] sm:$0xff] %v644_v19  ;;  %v482_v42 = vld [vmem:[#allocation2 + $0x4a0] sm:$0xff]  ;;  %v483_v43 = vld [vmem:[#allocation2 + $0x4a8] sm:$0xff]  ;;  %v1346_v58 = vpop.eup %1045  ;;  %v663_v36 = vmul.f32 %v1042_v20, %v474_v24  ;;  %v664_v59 = vmul.f32 %v1042_v20, %v475_v25  ;;  %v665_v60 = vmul.f32 %v1042_v20, %v476_v27 }
  0xff   :  { %835 = vst [vmem:[#allocation5 + $0x3d0] sm:$0xff] %v645_v22  ;;  %v484_v44 = vld [vmem:[#allocation2 + $0x4b0] sm:$0xff]  ;;  %836 = vst [vmem:[#allocation5 + $0x3d8] sm:$0xff] %v646_v1  ;;  %v485_v48 = vld [vmem:[#allocation2 + $0x4b8] sm:$0xff]  ;;  %v1349_v0 = vpop.eup %1047  ;;  %v666_v2 = vmul.f32 %v1042_v20, %v477_v31  ;;  %v667_v3 = vmul.f32 %v1042_v20, %v478_v32  ;;  %v668_v4 = vmul.f32 %v1042_v20, %v479_v33 }
 0x100   :  { %837 = vst [vmem:[#allocation5 + $0x3e0] sm:$0xff] %v647_v29  ;;  %838 = vst.msk [vmem:[#allocation5 + $0x3e8] sm:$0xff] %vm718_vm1, %v648_v26  ;;  %v486_v49 = vld [vmem:[#allocation2 + $0x4c0] sm:$0xff]  ;;  %v487_v50 = vld [vmem:[#allocation2 + $0x4c8] sm:$0xff]  ;;  %v669_v5 = vmul.f32 %v1042_v20, %v480_v34  ;;  %v1351_v9 = vpop.eup %1049  ;;  %v670_v10 = vmul.f32 %v1044_v51, %v481_v41  ;;  %v671_v12 = vmul.f32 %v1044_v51, %v482_v42 }
 0x101   :  { %839 = vst [vmem:[#allocation5 + $0x3f0] sm:$0xff] %v649_v30  ;;  %840 = vst [vmem:[#allocation5 + $0x3f8] sm:$0xff] %v650_v37  ;;  %v488_v56 = vld [vmem:[#allocation2 + $0x4d0] sm:$0xff]  ;;  %v489_v11 = vld [vmem:[#allocation2 + $0x4d8] sm:$0xff]  ;;  %v672_v13 = vmul.f32 %v1044_v51, %v483_v43  ;;  %v673_v14 = vmul.f32 %v1044_v51, %v484_v44  ;;  %v1052_v18 = vpop.eup %1051  ;;  %v674_v19 = vmul.f32 %v1044_v51, %v485_v48 }
 0x102   :  { %841 = vst [vmem:[#allocation5 + $0x400] sm:$0xff] %v651_v38  ;;  %842 = vst [vmem:[#allocation5 + $0x408] sm:$0xff] %v652_v39  ;;  %v490_v57 = vld [vmem:[#allocation2 + $0x4e0] sm:$0xff]  ;;  %v491_v62 = vld [vmem:[#allocation2 + $0x4e8] sm:$0xff]  ;;  %v675_v22 = vmul.f32 %v1044_v51, %v486_v49  ;;  %v676_v23 = vmul.f32 %v1044_v51, %v487_v50  ;;  %v677_v24 = vmul.f32 %v1346_v58, %v488_v56  ;;  %v1054_v1 = vpop.eup %1053 }
 0x103   :  { %843 = vst [vmem:[#allocation5 + $0x410] sm:$0xff] %v653_v40  ;;  %844 = vst [vmem:[#allocation5 + $0x418] sm:$0xff] %v654_v45  ;;  %v492_v63 = vld [vmem:[#allocation2 + $0x4f0] sm:$0xff]  ;;  %v493_v61 = vld [vmem:[#allocation2 + $0x4f8] sm:$0xff]  ;;  %v678_v29 = vmul.f32 %v1346_v58, %v489_v11  ;;  %v679_v26 = vmul.f32 %v1346_v58, %v490_v57  ;;  %v680_v30 = vmul.f32 %v1346_v58, %v491_v62 }
 0x104   :  { %845 = vst.msk [vmem:[#allocation5 + $0x420] sm:$0xff] %vm718_vm1, %v655_v46  ;;  %846 = vst [vmem:[#allocation5 + $0x428] sm:$0xff] %v656_v21  ;;  %v494_v6 = vld [vmem:[#allocation2 + $0x500] sm:$0xff]  ;;  %v495_v7 = vld [vmem:[#allocation2 + $0x508] sm:$0xff]  ;;  %v681_v31 = vmul.f32 %v1346_v58, %v492_v63  ;;  %v682_v20 = vmul.f32 %v1346_v58, %v493_v61 }
 0x105   :  { %847 = vst [vmem:[#allocation5 + $0x430] sm:$0xff] %v657_v47  ;;  %848 = vst [vmem:[#allocation5 + $0x438] sm:$0xff] %v658_v52  ;;  %v496_v8 = vld [vmem:[#allocation2 + $0x510] sm:$0xff]  ;;  %v497_v15 = vld [vmem:[#allocation2 + $0x518] sm:$0xff]  ;;  %v683_v37 = vmul.f32 %v1346_v58, %v494_v6  ;;  %v684_v38 = vmul.f32 %v1349_v0, %v495_v7 }
 0x106   :  { %849 = vst [vmem:[#allocation5 + $0x440] sm:$0xff] %v659_v53  ;;  %850 = vst [vmem:[#allocation5 + $0x448] sm:$0xff] %v660_v54  ;;  %v498_v16 = vld [vmem:[#allocation2 + $0x520] sm:$0xff]  ;;  %v499_v17 = vld [vmem:[#allocation2 + $0x528] sm:$0xff]  ;;  %v685_v39 = vmul.f32 %v1349_v0, %v496_v8  ;;  %v686_v43 = vmul.f32 %v1349_v0, %v497_v15  ;;  %v278_v54 = vadd.f32 1.0, %v1052_v18 }
 0x107   :  { %851 = vst [vmem:[#allocation5 + $0x450] sm:$0xff] %v661_v55  ;;  %852 = vst.msk [vmem:[#allocation5 + $0x458] sm:$0xff] %vm718_vm1, %v662_v35  ;;  %v500_v25 = vld [vmem:[#allocation2 + $0x530] sm:$0xff]  ;;  %v501_v27 = vld [vmem:[#allocation2 + $0x538] sm:$0xff]  ;;  %v687_v44 = vmul.f32 %v1349_v0, %v498_v16  ;;  %v688_v45 = vmul.f32 %v1349_v0, %v499_v17  ;;  %v279_v55 = vadd.f32 1.0, %v1054_v1 }
 0x108   :  { %853 = vst [vmem:[#allocation5 + $0x460] sm:$0xff] %v663_v36  ;;  %854 = vst [vmem:[#allocation5 + $0x468] sm:$0xff] %v664_v59  ;;  %v502_v28 = vld [vmem:[#allocation2 + $0x540] sm:$0xff]  ;;  %v503_v32 = vld [vmem:[#allocation2 + $0x548] sm:$0xff]  ;;  %v689_v46 = vmul.f32 %v1349_v0, %v500_v25  ;;  %v690_v21 = vmul.f32 %v1349_v0, %v501_v27  ;;  %1055 = vrcp.f32 %v278_v54 }
 0x109   :  { %855 = vst [vmem:[#allocation5 + $0x470] sm:$0xff] %v665_v60  ;;  %856 = vst [vmem:[#allocation5 + $0x478] sm:$0xff] %v666_v2  ;;  %v504_v33 = vld [vmem:[#allocation2 + $0x550] sm:$0xff]  ;;  %v505_v34 = vld [vmem:[#allocation2 + $0x558] sm:$0xff]  ;;  %v691_v47 = vmul.f32 %v1351_v9, %v502_v28  ;;  %v692_v48 = vmul.f32 %v1351_v9, %v503_v32  ;;  %1057 = vrcp.f32 %v279_v55 }
 0x10a   :  { %857 = vst [vmem:[#allocation5 + $0x480] sm:$0xff] %v667_v3  ;;  %858 = vst [vmem:[#allocation5 + $0x488] sm:$0xff] %v668_v4  ;;  %v506_v40 = vld [vmem:[#allocation2 + $0x560] sm:$0xff]  ;;  %v507_v41 = vld [vmem:[#allocation2 + $0x568] sm:$0xff]  ;;  %v693_v49 = vmul.f32 %v1351_v9, %v504_v33  ;;  %v694_v50 = vmul.f32 %v1351_v9, %v505_v34 }
 0x10b   :  { %859 = vst.msk [vmem:[#allocation5 + $0x490] sm:$0xff] %vm718_vm1, %v669_v5  ;;  %860 = vst [vmem:[#allocation5 + $0x498] sm:$0xff] %v670_v10  ;;  %v508_v42 = vld [vmem:[#allocation2 + $0x570] sm:$0xff]  ;;  %v695_v51 = vmul.f32 %v1351_v9, %v506_v40  ;;  %v696_v52 = vmul.f32 %v1351_v9, %v507_v41  ;;  %v509_v56 = vld [vmem:[#allocation2 + $0x578] sm:$0xff] }
 0x10c   :  { %861 = vst [vmem:[#allocation5 + $0x4a0] sm:$0xff] %v671_v12  ;;  %862 = vst [vmem:[#allocation5 + $0x4a8] sm:$0xff] %v672_v13  ;;  %v697_v53 = vmul.f32 %v1351_v9, %v508_v42  ;;  %v510_v11 = vld [vmem:[#allocation2 + $0x580] sm:$0xff]  ;;  %v511_v57 = vld [vmem:[#allocation2 + $0x588] sm:$0xff] }
 0x10d   :  { %863 = vst [vmem:[#allocation5 + $0x4b0] sm:$0xff] %v673_v14  ;;  %864 = vst [vmem:[#allocation5 + $0x4b8] sm:$0xff] %v674_v19  ;;  %v512_v58 = vld [vmem:[#allocation2 + $0x590] sm:$0xff]  ;;  %v513_v35 = vld [vmem:[#allocation2 + $0x598] sm:$0xff] }
 0x10e   :  { %865 = vst [vmem:[#allocation5 + $0x4c0] sm:$0xff] %v675_v22  ;;  %866 = vst.msk [vmem:[#allocation5 + $0x4c8] sm:$0xff] %vm718_vm1, %v676_v23  ;;  %v514_v36 = vld [vmem:[#allocation2 + $0x5a0] sm:$0xff]  ;;  %v515_v59 = vld [vmem:[#allocation2 + $0x5a8] sm:$0xff] }
 0x10f   :  { %867 = vst [vmem:[#allocation5 + $0x4d0] sm:$0xff] %v677_v24  ;;  %868 = vst [vmem:[#allocation5 + $0x4d8] sm:$0xff] %v678_v29  ;;  %v516_v60 = vld [vmem:[#allocation2 + $0x5b0] sm:$0xff]  ;;  %v517_v62 = vld [vmem:[#allocation2 + $0x5b8] sm:$0xff] }
 0x110   :  { %869 = vst [vmem:[#allocation5 + $0x4e0] sm:$0xff] %v679_v26  ;;  %870 = vst [vmem:[#allocation5 + $0x4e8] sm:$0xff] %v680_v30  ;;  %v518_v61 = vld [vmem:[#allocation2 + $0x5c0] sm:$0xff]  ;;  %v519_v0 = vld [vmem:[#allocation2 + $0x5c8] sm:$0xff] }
 0x111   :  { %871 = vst [vmem:[#allocation5 + $0x4f0] sm:$0xff] %v681_v31  ;;  %872 = vst [vmem:[#allocation5 + $0x4f8] sm:$0xff] %v682_v20  ;;  %v520_v2 = vld [vmem:[#allocation2 + $0x5d0] sm:$0xff]  ;;  %v521_v8 = vld [vmem:[#allocation2 + $0x5d8] sm:$0xff] }
 0x112   :  { %873 = vst.msk [vmem:[#allocation5 + $0x500] sm:$0xff] %vm718_vm1, %v683_v37  ;;  %874 = vst [vmem:[#allocation5 + $0x508] sm:$0xff] %v684_v38  ;;  %v1056_v63 = vpop.eup %1055  ;;  %v522_v9 = vld [vmem:[#allocation2 + $0x5e0] sm:$0xff] }
 0x113   :  { %875 = vst [vmem:[#allocation5 + $0x510] sm:$0xff] %v685_v39  ;;  %876 = vst [vmem:[#allocation5 + $0x518] sm:$0xff] %v686_v43  ;;  %v1058_v3 = vpop.eup %1057  ;;  %v698_v4 = vmul.f32 %v1056_v63, %v509_v56  ;;  %v699_v5 = vmul.f32 %v1056_v63, %v510_v11  ;;  %v700_v6 = vmul.f32 %v1056_v63, %v511_v57 }
 0x114   :  { %877 = vst [vmem:[#allocation5 + $0x520] sm:$0xff] %v687_v44  ;;  %878 = vst [vmem:[#allocation5 + $0x528] sm:$0xff] %v688_v45  ;;  %v701_v7 = vmul.f32 %v1056_v63, %v512_v58  ;;  %v702_v10 = vmul.f32 %v1056_v63, %v513_v35  ;;  %v703_v12 = vmul.f32 %v1056_v63, %v514_v36 }
 0x115   :  { %879 = vst [vmem:[#allocation5 + $0x530] sm:$0xff] %v689_v46  ;;  %880 = vst.msk [vmem:[#allocation5 + $0x538] sm:$0xff] %vm718_vm1, %v690_v21  ;;  %v704_v13 = vmul.f32 %v1056_v63, %v515_v59  ;;  %v705_v14 = vmul.f32 %v1058_v3, %v516_v60  ;;  %v706_v15 = vmul.f32 %v1058_v3, %v517_v62 }
 0x116   :  { %881 = vst [vmem:[#allocation5 + $0x540] sm:$0xff] %v691_v47  ;;  %882 = vst [vmem:[#allocation5 + $0x548] sm:$0xff] %v692_v48  ;;  %v707_v16 = vmul.f32 %v1058_v3, %v518_v61  ;;  %v708_v17 = vmul.f32 %v1058_v3, %v519_v0  ;;  %v709_v18 = vmul.f32 %v1058_v3, %v520_v2 }
 0x117   :  { %883 = vst [vmem:[#allocation5 + $0x550] sm:$0xff] %v693_v49  ;;  %884 = vst [vmem:[#allocation5 + $0x558] sm:$0xff] %v694_v50  ;;  %v710_v19 = vmul.f32 %v1058_v3, %v521_v8  ;;  %v711_v22 = vmul.f32 %v1058_v3, %v522_v9 }
 0x118   :  { %885 = vst [vmem:[#allocation5 + $0x560] sm:$0xff] %v695_v51  ;;  %886 = vst [vmem:[#allocation5 + $0x568] sm:$0xff] %v696_v52 }
 0x119   :  { %887 = vst.msk [vmem:[#allocation5 + $0x570] sm:$0xff] %vm718_vm1, %v697_v53  ;;  %888 = vst [vmem:[#allocation5 + $0x578] sm:$0xff] %v698_v4 }
 0x11a   :  { %889 = vst [vmem:[#allocation5 + $0x580] sm:$0xff] %v699_v5  ;;  %890 = vst [vmem:[#allocation5 + $0x588] sm:$0xff] %v700_v6 }
 0x11b   :  { %891 = vst [vmem:[#allocation5 + $0x590] sm:$0xff] %v701_v7  ;;  %892 = vst [vmem:[#allocation5 + $0x598] sm:$0xff] %v702_v10 }
 0x11c   :  { %893 = vst [vmem:[#allocation5 + $0x5a0] sm:$0xff] %v703_v12  ;;  %894 = vst.msk [vmem:[#allocation5 + $0x5a8] sm:$0xff] %vm718_vm1, %v704_v13 }
 0x11d   :  { %895 = vst [vmem:[#allocation5 + $0x5b0] sm:$0xff] %v705_v14  ;;  %896 = vst [vmem:[#allocation5 + $0x5b8] sm:$0xff] %v706_v15 }
 0x11e   :  { %897 = vst [vmem:[#allocation5 + $0x5c0] sm:$0xff] %v707_v16  ;;  %898 = vst [vmem:[#allocation5 + $0x5c8] sm:$0xff] %v708_v17 }
 0x11f   :  { %899 = vst [vmem:[#allocation5 + $0x5d0] sm:$0xff] %v709_v18  ;;  %900 = vst [vmem:[#allocation5 + $0x5d8] sm:$0xff] %v710_v19 }
 0x120   :  { %901 = vst.msk [vmem:[#allocation5 + $0x5e0] sm:$0xff] %vm718_vm1, %v711_v22 }
 0x121   :  { %1092 = shalt.err (!%p1089_p12)
}
 0x122   :  { %s1093_s2 = scalar_lea.hbm %s1400_s3, 24192 }
 0x123   :  { %p1094_p13 = scmp.ne.s32.totalorder %s1400_s3, %s1093_s2  ;;  %p1097_p0 = scmp.lt.u32.totalorder %s1093_s2, %s1400_s3 }
 0x125   :  { %p1099_p1 = pnand %p1097_p0, %p1094_p13 }
 0x127   :  { %1102 = shalt.err (!%p1099_p1)
}
 0x128   :  { %913 = dma.vmem_to_hbm [thread:$0]  %s908_s28, 24192, %s1400_s3, [#allocation4], %s1108_s22, %s1108_s22, %s1109_s23  }
 0x129   :  { %1105 = dma.done.wait [#allocation4], 24192  }
 0x12a   :  { %1106 = vsyncadd [#allocation4], 4294943104 }
 0x12b   :  { %917 = vsyncpa [#allocation3], 1 }
 0x12c   :  { %918 = vsyncpa [#allocation4], 1 }

</bundles_post_ra>
